<compile_context>
chip_gen: v7x
topology: tpu7x:2x2x1
jax: 0.10.0
libtpu: 0.0.40
codegen_flags: <defaults>
</compile_context>

<pallas_src>
import jax
import jax.numpy as jnp
from jax.experimental import pallas as pl
from jax.experimental.pallas import tpu as pltpu


def _linear_kernel(x_ref, w_ref, b_ref, o_ref):
    # x_ref: (tb, D) VMEM   w_ref: (1, D) VMEM   b_ref: (1, 1) SMEM   o_ref: (1, tb) VMEM
    # Contract the feature dims (lhs dim 1 with rhs dim 1): the standard "q @ k^T"-style
    # transposed-rhs matmul, driven on the MXU without materializing x^T. Result (1, tb)
    # is lane-dense, f32-accumulated; bias added before the store cast.
    y = jax.lax.dot_general(
        w_ref[...],
        x_ref[...],
        dimension_numbers=(((1,), (1,)), ((), ())),
        preferred_element_type=jnp.float32,
    )
    o_ref[...] = (y + b_ref[0, 0]).astype(o_ref.dtype)


def _round_up(n, m):
    return ((n + m - 1) // m) * m


def _vmem_plan():
    """Per-generation VMEM plan: (x-tile budget covering double buffers + relayout
    headroom, vmem_limit_bytes). v5e/v6e have 128 MiB VMEM per TensorCore, v7x only
    64 MiB, so both numbers are derived from the reported capacity."""
    try:
        cap = int(pltpu.get_tpu_info().vmem_capacity_bytes)
    except Exception:
        cap = 64 << 20  # conservative fallback (v7x-sized)
    if cap >= (100 << 20):          # v5e / v6e: 128 MiB physical
        return 80 << 20, 100 << 20
    else:                           # v7x (64 MiB per TC) or unknown
        return 40 << 20, 56 << 20


def _choose_tb(B, D, dtype, x_budget_bytes, requested=None):
    """Batch tile size.

    - rows are costed with the lane-padded feature width (round_up(D, 128)) because a
      VMEM tile pads its minor dim to 128 lanes
    - tb is a multiple of the dtype's sublane packing (8 f32 / 16 bf16 / 32 int8)
    - the x budget is split over 4 tile-sized copies (2 pipeline buffers + headroom for
      any compiler relayout scratch)
    - when more than one batch tile is needed, tb is a multiple of 128 so the (1, tb)
      output block is lane-dense / unmasked
    """
    itemsize = jnp.dtype(dtype).itemsize
    sublane = max(8, 32 // max(itemsize, 1))
    row_bytes = _round_up(D, 128) * itemsize
    b_rounded = _round_up(B, sublane)

    if requested is not None:
        tb = _round_up(int(requested), sublane)
    else:
        per_tile = max(x_budget_bytes // 4, row_bytes)
        max_rows = max(sublane, (per_tile // row_bytes) // sublane * sublane)
        tb = min(b_rounded, max_rows)

    tb = max(tb, sublane)
    if tb < b_rounded:
        # Multiple batch tiles -> lane-dense single-row output requires tb % 128 == 0.
        # (For extreme D where even 128 rows overflow the budget, a K-tiled grid axis
        #  with an f32 accumulator would be the proper fallback.)
        if requested is not None:
            tb = max(128, _round_up(tb, 128))
        else:
            tb = max(128, (tb // 128) * 128)
    return tb


def logistic_regression_forward(x, weight, bias, *, tb=None):
    """Forward pass of nn.Linear(input_dim, 1): y = x @ W.T + b.

    x:      (B, D) float32
    weight: (1, D) float32   (PyTorch nn.Linear layout [out_features, in_features])
    bias:   (1,)   float32
    returns (B, 1) float32
    """
    B, D = x.shape
    assert weight.shape == (1, D)
    x_budget, vmem_limit = _vmem_plan()
    tb = _choose_tb(B, D, x.dtype, x_budget, requested=tb)
    num_tiles = pl.cdiv(B, tb)
    b_padded = num_tiles * tb
    b2d = bias.reshape(1, 1).astype(jnp.float32)
    itemsize = jnp.dtype(x.dtype).itemsize

    cost = pl.CostEstimate(
        flops=2 * B * D,
        transcendentals=0,
        bytes_accessed=B * D * itemsize + D * itemsize + B * itemsize,
    )

    out = pl.pallas_call(
        _linear_kernel,
        out_shape=jax.ShapeDtypeStruct((1, b_padded), x.dtype),
        grid_spec=pltpu.PrefetchScalarGridSpec(
            num_scalar_prefetch=0,
            grid=(num_tiles,),
            in_specs=[
                pl.BlockSpec((tb, D), lambda i: (i, 0)),    # x tile streamed over batch
                pl.BlockSpec((1, D), lambda i: (0, 0)),     # weight row, resident
                pl.BlockSpec((1, 1), lambda i: (0, 0),
                             memory_space=pltpu.MemorySpace.SMEM),  # bias scalar
            ],
            # Single-row, lane-dense output: block (1, tb) over a (1, num_tiles*tb) array.
            out_specs=pl.BlockSpec((1, tb), lambda i: (0, i)),
        ),
        compiler_params=pltpu.CompilerParams(
            # On v7x (2 TCs) confirm via an xprof trace that the batch axis shards across
            # both cores; switch to pltpu.CORE_PARALLEL / pl.core_map if only one TC is busy.
            dimension_semantics=("parallel",),
            vmem_limit_bytes=vmem_limit,
        ),
        cost_estimate=cost,
    )(x, weight, b2d)

    # (1, b_padded) lane-dense row -> (B, 1); garbage lanes from a partial last tile dropped.
    return out[0, :B].reshape(B, 1)


if __name__ == "__main__":
    key = jax.random.PRNGKey(0)
    kx, kw, kb = jax.random.split(key, 3)

    # Small shapes consistent with the module: batch=8, input_dim=32.
    B, D = 8, 32
    bound = 1.0 / jnp.sqrt(jnp.float32(D))  # nn.Linear init range U(-1/sqrt(D), 1/sqrt(D))
    weight = jax.random.uniform(kw, (1, D), jnp.float32, -bound, bound)
    bias = jax.random.uniform(kb, (1,), jnp.float32, -bound, bound)
    x = jax.random.normal(kx, (B, D), jnp.float32)

    out = jax.block_until_ready(logistic_regression_forward(x, weight, bias))
    ref = x @ weight.T + bias
    assert out.shape == (B, 1)
    assert jnp.allclose(out, ref, atol=1e-5, rtol=1e-5)

    # Multi-tile check with a partial last batch tile (grid > 1, lane-dense output path).
    B2, D2 = 300, 128
    k2x, k2w, k2b = jax.random.split(jax.random.PRNGKey(1), 3)
    w2 = jax.random.uniform(k2w, (1, D2), jnp.float32, -0.1, 0.1)
    b2 = jax.random.uniform(k2b, (1,), jnp.float32, -0.1, 0.1)
    x2 = jax.random.normal(k2x, (B2, D2), jnp.float32)
    out2 = jax.block_until_ready(logistic_regression_forward(x2, w2, b2, tb=128))
    ref2 = x2 @ w2.T + b2
    assert out2.shape == (B2, 1)
    assert jnp.allclose(out2, ref2, atol=1e-4, rtol=1e-4)

    print("KERNEL_OK")
</pallas_src>

<mosaic_0001>
module attributes {stable_mosaic.version = 11 : i64} {
  func.func @_linear_kernel(%arg0: i32, %arg1: memref<8x32xf32, #tpu.memory_space<vmem>>, %arg2: memref<1x32xf32, #tpu.memory_space<vmem>>, %arg3: memref<1x1xf32, #tpu.memory_space<smem>>, %arg4: memref<1x8xf32, #tpu.memory_space<vmem>>) attributes {dimension_semantics = [#tpu.dimension_semantics<parallel>], iteration_bounds = array<i64: 1>, scalar_prefetch = 0 : i64, scratch_operands = 0 : i64, tpu.core_type = #tpu.core_type<tc>, window_params = [{transform_indices = @transform_0, window_bounds = array<i64: 8, 32>}, {pipeline_mode = #tpu.pipeline_mode<synchronous>, transform_indices = @transform_1, window_bounds = array<i64: 1, 32>}, {transform_indices = @transform_2, window_bounds = array<i64: 1, 1>}, {transform_indices = @transform_3, window_bounds = array<i64: 1, 8>}]} {
    %c0 = arith.constant 0 : index
    %c0_0 = arith.constant 0 : index
    %0 = vector.load %arg2[%c0, %c0_0] : memref<1x32xf32, #tpu.memory_space<vmem>>, vector<1x32xf32>
    %c0_1 = arith.constant 0 : index
    %c0_2 = arith.constant 0 : index
    %1 = vector.load %arg1[%c0_1, %c0_2] : memref<8x32xf32, #tpu.memory_space<vmem>>, vector<8x32xf32>
    %cst = arith.constant dense<0.000000e+00> : vector<1x8xf32>
    %2 = tpu.matmul %0, %1, %cst {dimension_numbers = #tpu.dot_dimension_numbers<[1], [1], [0], [0], [0, 0, 1, 0], [], []>} : vector<1x32xf32>, vector<8x32xf32>, vector<1x8xf32> -> vector<1x8xf32>
    %c0_3 = arith.constant 0 : index
    %c0_4 = arith.constant 0 : index
    %3 = memref.load %arg3[%c0_3, %c0_4] : memref<1x1xf32, #tpu.memory_space<smem>>
    %4 = vector.broadcast %3 : f32 to vector<1x8xf32>
    %5 = arith.addf %2, %4 : vector<1x8xf32>
    %c0_5 = arith.constant 0 : index
    %c0_6 = arith.constant 0 : index
    %6 = vector.load %arg4[%c0_5, %c0_6] : memref<1x8xf32, #tpu.memory_space<vmem>>, vector<1x8xf32>
    tpu.vector_store %arg4[%c0_5, %c0_6], %5 {strides = array<i32>} : memref<1x8xf32, #tpu.memory_space<vmem>>, vector<1x8xf32>,
    return
  }
  func.func @transform_0(%arg0: i32) -> (i32, i32) {
    %c0_i32 = arith.constant 0 : i32
    %c0_i32_0 = arith.constant 0 : i32
    return %arg0, %c0_i32 : i32, i32
  }
  func.func @transform_1(%arg0: i32) -> (i32, i32) {
    %c0_i32 = arith.constant 0 : i32
    %c0_i32_0 = arith.constant 0 : i32
    %c0_i32_1 = arith.constant 0 : i32
    return %c0_i32, %c0_i32_0 : i32, i32
  }
  func.func @transform_2(%arg0: i32) -> (i32, i32) {
    %c0_i32 = arith.constant 0 : i32
    %c0_i32_0 = arith.constant 0 : i32
    %c0_i32_1 = arith.constant 0 : i32
    return %c0_i32, %c0_i32_0 : i32, i32
  }
  func.func @transform_3(%arg0: i32) -> (i32, i32) {
    %c0_i32 = arith.constant 0 : i32
    %c0_i32_0 = arith.constant 0 : i32
    return %c0_i32, %arg0 : i32, i32
  }
}

</mosaic_0001>

<bundles_post_ra>
// kernel: tpu_custom_call.1
= control target key start
LH: loop header
LB: loop body
LE: loop exit
PB: predicated region body
PF: predicated region fallthrough
CT: control target
= control target key end

     0   :  { %9 = vsyncpa [#allocation4], 0  ;;  %s241_s0 = inlined_call_operand.hbm [shape: f32[8,32], index: 0, kind: input, shape index: {}]   ;;  %s242_s1 = inlined_call_operand.vmem [shape: f32[1,32], index: 1, kind: input, shape index: {}]   ;;  %s243_s2 = inlined_call_operand.<no memory space> [shape: f32[1,1], index: 2, kind: input, shape index: {}]   ;;  %s244_s3 = inlined_call_operand.hbm [shape: f32[1,8], index: 3, kind: output, shape index: {}]  }
   0x1   :  { %10 = vsyncpa [#allocation5], 0  ;;  %s187_s12 = smov [#allocation3]   ;;  %s139_s16 = scalar_lea.hbm %s241_s0, 128 }
   0x2   :  { %s17_s13 = sshll.u32 %s187_s12, 4  ;;  %p140_p0 = scmp.ne.s32.totalorder %s241_s0, %s139_s16  ;;  %s18_s13 = int_to_ptr.vmem [resolvable:$true] %s17_s13 }
   0x3   :  { %p143_p1 = scmp.lt.u32.totalorder %s139_s16, %s241_s0 }
   0x5   :  { %p145_p2 = pnand %p143_p1, %p140_p0 }
   0x7   :  { %148 = shalt.err (!%p145_p2)
}
   0x8   :  { %s149_s21 = scalar_lea.vmem %s18_s13, 128  ;;  %p154_p4 = scmp.lt.s32.totalorder %s18_s13, %s18_s13 }
   0x9   :  { %p150_p3 = scmp.ne.s32.totalorder %s18_s13, %s149_s21  ;;  %p155_p5 = scmp.lt.s32.totalorder %s149_s21, %s149_s21 }
   0xb   :  { %p156_p6 = por %p155_p5, %p154_p4 }
   0xd   :  { %p157_p7 = pnand %p156_p6, %p150_p3 }
   0xf   :  { %160 = shalt.err (!%p157_p7)
}
  0x10   :  { %20 = dma.hbm_to_vmem [thread:$0]  %s241_s0, 128, %s18_s13, [#allocation4]  }
  0x11   :  { %183 = dma.done.wait [#allocation4], 128  }
  0x12   :  { %184 = vsyncadd [#allocation4], 4294967168  ;;  %v188_v0 = vmov 0.0   ;;  %vm189_vm0 = vmmov 0   ;;  %vm32_vm1 = vcmask 261120   ;;  %v29_v1 = vld [vmem:[#allocation3] sm:$0xff]  ;;  %v31_v3 = vstv %s243_s2 }
  0x13   :  { %130 = vmatprep.subr.mxu0 %v188_v0  ;;  %132 = vmatprep.mubr.msk.f32.mxu0 %vm189_vm0, %v188_v0  ;;  %v28_v2 = vld [vmem:[%s242_s1] sm:$0x1]  ;;  %s190_s28 = smov [#allocation6]   ;;  %vm109_vm2 = vcmask 57344  }
  0x14   :  { %131 = vmatpush3.xpose.msk.msra.mxu0 %vm32_vm1, %v29_v1  ;;  %s117_s0 = sshll.u32 %s190_s28, 4  ;;  %s118_s0 = int_to_ptr.vmem [resolvable:$true] %s117_s0 }
  0x15   :  { %s161_s29 = scalar_lea.vmem %s118_s0, 16  ;;  %s165_s30 = scalar_lea.vmem %s118_s0, 32 }
  0x16   :  { %p162_p8 = scmp.ne.s32.totalorder %s118_s0, %s161_s29  ;;  %p166_p9 = scmp.lt.s32.totalorder %s118_s0, %s118_s0 }
  0x17   :  { %133 = vmatmul.mubr.msk.f32.vlgmr.msra.gmra.mrb[0].mxu0 %vm32_vm1, %v28_v2  ;;  %p167_p10 = scmp.lt.s32.totalorder %s165_s30, %s161_s29 }
  0x19   :  { %p168_p11 = por %p167_p10, %p166_p9 }
  0x1b   :  { %p169_p12 = pnand %p168_p11, %p162_p8 }
  0xea   :  { %v105_v4 = vpop.f32.mrb[0].mxu0 }
  0xeb   :  { %v106_v5 = vadd.f32 %v105_v4, %v31_v3  ;;  %v134_v6 = vpop.f32.mrb[1].mxu0 }
  0xed   :  { %110 = vst.msk [vmem:[#allocation6] sm:$0x1] %vm109_vm2, %v106_v5 }
  0xee   :  { %172 = shalt.err (!%p169_p12)
}
  0xef   :  { %s173_s2 = scalar_lea.hbm %s244_s3, 16 }
  0xf0   :  { %p174_p13 = scmp.ne.s32.totalorder %s244_s3, %s173_s2  ;;  %p177_p0 = scmp.lt.u32.totalorder %s173_s2, %s244_s3 }
  0xf2   :  { %p179_p1 = pnand %p177_p0, %p174_p13 }
  0xf4   :  { %182 = shalt.err (!%p179_p1)
}
  0xf5   :  { %120 = dma.vmem_to_hbm [thread:$0]  %s118_s0, 16, %s244_s3, [#allocation5]  }
  0xf6   :  { %185 = dma.done.wait [#allocation5], 16  }
  0xf7   :  { %186 = vsyncadd [#allocation5], 4294967280 }
  0xf8   :  { %124 = vsyncpa [#allocation4], 1 }
  0xf9   :  { %125 = vsyncpa [#allocation5], 1 }

</bundles_post_ra>
